<compile_context>
chip_gen: v5e
topology: v5e:2x2
jax: 0.10.0
libtpu: 0.0.40
codegen_flags: <defaults>
</compile_context>

<pallas_src>
import jax
import jax.numpy as jnp
from jax.experimental import pallas as pl
from jax.experimental.pallas import tpu as pltpu


def _round_up(x, m):
    return (x + m - 1) // m * m


def _default_vmem_limit():
    """~75% of physical VMEM, capped at 100 MiB (=> ~48 MiB v7x, ~96 MiB v5e/v6e)."""
    try:
        cap = pltpu.get_tpu_info().vmem_capacity_bytes
    except Exception:
        cap = 128 * 1024 * 1024
    return min(int(cap) * 3 // 4, 100 * 1024 * 1024)


# ----------------------------------------------------------------------------
# Kernel 1: MLP (Linear->ReLU->Linear->ReLU->Linear) + L2 normalize
# ----------------------------------------------------------------------------
def mlp_l2norm_kernel(x_ref, w1_ref, b1_ref, w2_ref, b2_ref, w3_ref, b3_ref,
                      zn_ref):
    h = jnp.dot(x_ref[...], w1_ref[...],
                preferred_element_type=jnp.float32) + b1_ref[...]
    h = jnp.maximum(h, 0.0).astype(jnp.bfloat16)
    h = jnp.dot(h, w2_ref[...],
                preferred_element_type=jnp.float32) + b2_ref[...]
    h = jnp.maximum(h, 0.0).astype(jnp.bfloat16)
    z = jnp.dot(h, w3_ref[...],
                preferred_element_type=jnp.float32) + b3_ref[...]
    # F.normalize(z, dim=-1, p=2): z / max(||z||, 1e-12); rsqrt rides the EUP slot.
    inv = jax.lax.rsqrt(
        jnp.maximum(jnp.sum(z * z, axis=-1, keepdims=True), 1e-24))
    zn_ref[...] = (z * inv).astype(zn_ref.dtype)


# ----------------------------------------------------------------------------
# Kernel 2: weight-normed last layer   o = (zn @ v) * (1 / ||v||_col)
# ----------------------------------------------------------------------------
def last_layer_kernel(zn_ref, v_ref, s_ref, o_ref):
    acc = jnp.dot(zn_ref[...], v_ref[...], preferred_element_type=jnp.float32)
    o_ref[...] = (acc * s_ref[...]).astype(o_ref.dtype)


# ----------------------------------------------------------------------------
# Wrapper
# ----------------------------------------------------------------------------
def prepare_params(params):
    """One-time conversion of f32 params into kernel-ready operands.

    Cache the result across forward calls: avoids re-reading the f32 weights and
    writing bf16 copies (un-hidden XLA passes) on every call, and replaces the
    v_hat materialization with a tiny [1, out] inverse column-norm vector.
    """
    v32 = params["v"].astype(jnp.float32)
    inv_col = 1.0 / jnp.maximum(
        jnp.sqrt(jnp.sum(v32 * v32, axis=0, keepdims=True)), 1e-12)
    return {
        "w1": params["w1"].astype(jnp.bfloat16),
        "b1": params["b1"].astype(jnp.float32),
        "w2": params["w2"].astype(jnp.bfloat16),
        "b2": params["b2"].astype(jnp.float32),
        "w3": params["w3"].astype(jnp.bfloat16),
        "b3": params["b3"].astype(jnp.float32),
        "v": params["v"].astype(jnp.bfloat16),        # [bot, out] bf16
        "inv_col": inv_col.astype(jnp.float32),       # [1, out]   f32
    }


def dino_head_forward(x, prepared, *, tile_b=256, tile_n=2048,
                      out_dtype=jnp.float32, vmem_limit_bytes=None):
    """x: [B, in_dim] float32.  prepared: output of prepare_params()."""
    B, in_dim = x.shape
    w1, b1 = prepared["w1"], prepared["b1"]          # [in, hid],  [1, hid]
    w2, b2 = prepared["w2"], prepared["b2"]          # [hid, hid], [1, hid]
    w3, b3 = prepared["w3"], prepared["b3"]          # [hid, bot], [1, bot]
    v, inv_col = prepared["v"], prepared["inv_col"]  # [bot, out], [1, out]
    hid = w1.shape[1]
    bot = w3.shape[1]
    out_dim = v.shape[1]

    if vmem_limit_bytes is None:
        vmem_limit_bytes = _default_vmem_limit()

    # --- batch tiling with remainder handling -------------------------------
    tb = min(tile_b, _round_up(B, 8))
    b_pad = _round_up(B, tb)
    xb = x.astype(jnp.bfloat16)
    if b_pad != B:
        xb = jnp.pad(xb, ((0, b_pad - B), (0, 0)))
    nb = b_pad // tb

    # --- kernel 1: MLP + L2-normalize ---------------------------------------
    const1 = lambda i: (0, 0)
    zn = pl.pallas_call(
        mlp_l2norm_kernel,
        out_shape=jax.ShapeDtypeStruct((b_pad, bot), jnp.bfloat16),
        grid_spec=pltpu.PrefetchScalarGridSpec(
            num_scalar_prefetch=0,
            grid=(nb,),
            in_specs=[
                pl.BlockSpec((tb, in_dim), lambda i: (i, 0)),   # x tile
                pl.BlockSpec((in_dim, hid), const1),            # w1
                pl.BlockSpec((1, hid), const1),                 # b1
                pl.BlockSpec((hid, hid), const1),               # w2
                pl.BlockSpec((1, hid), const1),                 # b2
                pl.BlockSpec((hid, bot), const1),               # w3
                pl.BlockSpec((1, bot), const1),                 # b3
            ],
            out_specs=pl.BlockSpec((tb, bot), lambda i: (i, 0)),
        ),
        compiler_params=pltpu.CompilerParams(
            dimension_semantics=("parallel",),
            vmem_limit_bytes=vmem_limit_bytes,
        ),
    )(xb, w1, b1, w2, b2, w3, b3)

    # --- kernel 2: streaming weight-normed last layer ------------------------
    # Lane-dense out-dim tiling (multiple of 128).
    tn = min(tile_n, _round_up(out_dim, 128))
    out_pad = _round_up(out_dim, tn)
    vp, sp = v, inv_col
    if out_pad != out_dim:
        vp = jnp.pad(vp, ((0, 0), (0, out_pad - out_dim)))
        sp = jnp.pad(sp, ((0, 0), (0, out_pad - out_dim)))
    n_out_tiles = out_pad // tn

    out = pl.pallas_call(
        last_layer_kernel,
        out_shape=jax.ShapeDtypeStruct((b_pad, out_pad), out_dtype),
        grid_spec=pltpu.PrefetchScalarGridSpec(
            num_scalar_prefetch=0,
            grid=(nb, n_out_tiles),
            in_specs=[
                pl.BlockSpec((tb, bot), lambda i, j: (i, 0)),   # zn tile
                pl.BlockSpec((bot, tn), lambda i, j: (0, j)),   # v tile (bf16)
                pl.BlockSpec((1, tn), lambda i, j: (0, j)),     # inv col-norm
            ],
            out_specs=pl.BlockSpec((tb, tn), lambda i, j: (i, j)),
        ),
        compiler_params=pltpu.CompilerParams(
            dimension_semantics=("parallel", "parallel"),
            vmem_limit_bytes=vmem_limit_bytes,
        ),
    )(zn, vp, sp)

    return out[:B, :out_dim]


# ----------------------------------------------------------------------------
# Synthetic params + pure-JAX reference
# ----------------------------------------------------------------------------
def make_params(key, in_dim, hidden_dim, bottleneck_dim, out_dim):
    """Synthetic init mirroring DINOHead: Linear weights ~ trunc_normal(0.02),
    biases = 0; last-layer weight_v ~ normal, weight_g == 1 (folded into the
    column-norm scale).  Weights stored transposed [in, out]."""
    k1, k2, k3, k4 = jax.random.split(key, 4)
    tnrm = lambda k, shape: (0.02 * jax.random.truncated_normal(
        k, -2.0, 2.0, shape, jnp.float32))
    return {
        "w1": tnrm(k1, (in_dim, hidden_dim)),
        "b1": jnp.zeros((1, hidden_dim), jnp.float32),
        "w2": tnrm(k2, (hidden_dim, hidden_dim)),
        "b2": jnp.zeros((1, hidden_dim), jnp.float32),
        "w3": tnrm(k3, (hidden_dim, bottleneck_dim)),
        "b3": jnp.zeros((1, bottleneck_dim), jnp.float32),
        "v": jax.random.normal(k4, (bottleneck_dim, out_dim), jnp.float32),
    }


def dino_head_ref(x, p):
    """Pure-JAX reference mirroring the module (with the kernel's bf16 operand
    rounding so the comparison is tight)."""
    f32 = lambda a: a.astype(jnp.float32)
    bf = lambda a: a.astype(jnp.bfloat16)
    xb = f32(bf(x))
    h = jnp.maximum(xb @ f32(bf(p["w1"])) + p["b1"], 0.0)
    h = f32(bf(h))
    h = jnp.maximum(h @ f32(bf(p["w2"])) + p["b2"], 0.0)
    h = f32(bf(h))
    z = h @ f32(bf(p["w3"])) + p["b3"]
    zn = z / jnp.maximum(jnp.linalg.norm(z, axis=-1, keepdims=True), 1e-12)
    v = p["v"]
    inv = 1.0 / jnp.maximum(jnp.linalg.norm(v, axis=0, keepdims=True), 1e-12)
    return (f32(bf(zn)) @ f32(bf(v))) * inv


if __name__ == "__main__":
    # Small shapes consistent with DINOHead(in_dim, out_dim, hidden_dim, bottleneck_dim)
    B, in_dim, hidden_dim, bottleneck_dim, out_dim = 16, 32, 64, 32, 48

    key = jax.random.PRNGKey(0)
    kx, kp = jax.random.split(key)
    x = jax.random.normal(kx, (B, in_dim), jnp.float32)
    params = make_params(kp, in_dim, hidden_dim, bottleneck_dim, out_dim)
    prepared = prepare_params(params)   # one-time bf16 cast + col-norm (cacheable)

    ref = dino_head_ref(x, params)

    # Default (f32 output) path — matches the module's output dtype.
    out = jax.block_until_ready(dino_head_forward(x, prepared))
    assert out.shape == (B, out_dim)
    assert jnp.allclose(out, ref, atol=2e-2, rtol=2e-2), (
        float(jnp.max(jnp.abs(out - ref))))

    # bf16-output fast path (halves the dominant HBM writeback; intentional
    # precision tradeoff documented above).
    out_bf = jax.block_until_ready(
        dino_head_forward(x, prepared, out_dtype=jnp.bfloat16))
    assert out_bf.shape == (B, out_dim)
    assert jnp.allclose(out_bf.astype(jnp.float32), ref, atol=3e-2, rtol=3e-2), (
        float(jnp.max(jnp.abs(out_bf.astype(jnp.float32) - ref))))

    print("KERNEL_OK")
</pallas_src>

<mosaic_0001>
module attributes {stable_mosaic.version = 11 : i64} {
  func.func @mlp_l2norm_kernel(%arg0: i32, %arg1: memref<16x32xbf16, #tpu.memory_space<vmem>>, %arg2: memref<32x64xbf16, #tpu.memory_space<vmem>>, %arg3: memref<1x64xf32, #tpu.memory_space<vmem>>, %arg4: memref<64x64xbf16, #tpu.memory_space<vmem>>, %arg5: memref<1x64xf32, #tpu.memory_space<vmem>>, %arg6: memref<64x32xbf16, #tpu.memory_space<vmem>>, %arg7: memref<1x32xf32, #tpu.memory_space<vmem>>, %arg8: memref<16x32xbf16, #tpu.memory_space<vmem>>) attributes {dimension_semantics = [#tpu.dimension_semantics<parallel>], iteration_bounds = array<i64: 1>, scalar_prefetch = 0 : i64, scratch_operands = 0 : i64, tpu.core_type = #tpu.core_type<tc>, window_params = [{transform_indices = @transform_0, window_bounds = array<i64: 16, 32>}, {pipeline_mode = #tpu.pipeline_mode<synchronous>, transform_indices = @transform_1, window_bounds = array<i64: 32, 64>}, {pipeline_mode = #tpu.pipeline_mode<synchronous>, transform_indices = @transform_2, window_bounds = array<i64: 1, 64>}, {pipeline_mode = #tpu.pipeline_mode<synchronous>, transform_indices = @transform_3, window_bounds = array<i64: 64, 64>}, {pipeline_mode = #tpu.pipeline_mode<synchronous>, transform_indices = @transform_4, window_bounds = array<i64: 1, 64>}, {pipeline_mode = #tpu.pipeline_mode<synchronous>, transform_indices = @transform_5, window_bounds = array<i64: 64, 32>}, {pipeline_mode = #tpu.pipeline_mode<synchronous>, transform_indices = @transform_6, window_bounds = array<i64: 1, 32>}, {transform_indices = @transform_7, window_bounds = array<i64: 16, 32>}]} {
    %c0 = arith.constant 0 : index
    %c0_0 = arith.constant 0 : index
    %0 = vector.load %arg1[%c0, %c0_0] : memref<16x32xbf16, #tpu.memory_space<vmem>>, vector<16x32xbf16>
    %c0_1 = arith.constant 0 : index
    %c0_2 = arith.constant 0 : index
    %1 = vector.load %arg2[%c0_1, %c0_2] : memref<32x64xbf16, #tpu.memory_space<vmem>>, vector<32x64xbf16>
    %cst = arith.constant dense<0.000000e+00> : vector<16x64xf32>
    %2 = tpu.matmul %0, %1, %cst {dimension_numbers = #tpu.dot_dimension_numbers<[1], [0], [0], [1], [0, 0, 1, 1], [], []>} : vector<16x32xbf16>, vector<32x64xbf16>, vector<16x64xf32> -> vector<16x64xf32>
    %c0_3 = arith.constant 0 : index
    %c0_4 = arith.constant 0 : index
    %3 = vector.load %arg3[%c0_3, %c0_4] : memref<1x64xf32, #tpu.memory_space<vmem>>, vector<1x64xf32>
    %4 = vector.broadcast %3 : vector<1x64xf32> to vector<16x64xf32>
    %5 = arith.addf %2, %4 : vector<16x64xf32>
    %cst_5 = arith.constant 0.000000e+00 : f32
    %6 = vector.broadcast %cst_5 : f32 to vector<16x64xf32>
    %7 = arith.maximumf %5, %6 : vector<16x64xf32>
    %8 = arith.truncf %7 : vector<16x64xf32> to vector<16x64xbf16>
    %c0_6 = arith.constant 0 : index
    %c0_7 = arith.constant 0 : index
    %9 = vector.load %arg4[%c0_6, %c0_7] : memref<64x64xbf16, #tpu.memory_space<vmem>>, vector<64x64xbf16>
    %cst_8 = arith.constant dense<0.000000e+00> : vector<16x64xf32>
    %10 = tpu.matmul %8, %9, %cst_8 {dimension_numbers = #tpu.dot_dimension_numbers<[1], [0], [0], [1], [0, 0, 1, 1], [], []>} : vector<16x64xbf16>, vector<64x64xbf16>, vector<16x64xf32> -> vector<16x64xf32>
    %c0_9 = arith.constant 0 : index
    %c0_10 = arith.constant 0 : index
    %11 = vector.load %arg5[%c0_9, %c0_10] : memref<1x64xf32, #tpu.memory_space<vmem>>, vector<1x64xf32>
    %12 = vector.broadcast %11 : vector<1x64xf32> to vector<16x64xf32>
    %13 = arith.addf %10, %12 : vector<16x64xf32>
    %cst_11 = arith.constant 0.000000e+00 : f32
    %14 = vector.broadcast %cst_11 : f32 to vector<16x64xf32>
    %15 = arith.maximumf %13, %14 : vector<16x64xf32>
    %16 = arith.truncf %15 : vector<16x64xf32> to vector<16x64xbf16>
    %c0_12 = arith.constant 0 : index
    %c0_13 = arith.constant 0 : index
    %17 = vector.load %arg6[%c0_12, %c0_13] : memref<64x32xbf16, #tpu.memory_space<vmem>>, vector<64x32xbf16>
    %cst_14 = arith.constant dense<0.000000e+00> : vector<16x32xf32>
    %18 = tpu.matmul %16, %17, %cst_14 {dimension_numbers = #tpu.dot_dimension_numbers<[1], [0], [0], [1], [0, 0, 1, 1], [], []>} : vector<16x64xbf16>, vector<64x32xbf16>, vector<16x32xf32> -> vector<16x32xf32>
    %c0_15 = arith.constant 0 : index
    %c0_16 = arith.constant 0 : index
    %19 = vector.load %arg7[%c0_15, %c0_16] : memref<1x32xf32, #tpu.memory_space<vmem>>, vector<1x32xf32>
    %20 = vector.broadcast %19 : vector<1x32xf32> to vector<16x32xf32>
    %21 = arith.addf %18, %20 : vector<16x32xf32>
    %22 = arith.mulf %21, %21 : vector<16x32xf32>
    %cst_17 = arith.constant dense<0.000000e+00> : vector<16xf32>
    %23 = vector.multi_reduction <add>, %22, %cst_17 [1] : vector<16x32xf32> to vector<16xf32>
    %24 = vector.shape_cast %23 : vector<16xf32> to vector<16x1xf32>
    %cst_18 = arith.constant 1.000000e-24 : f32
    %25 = vector.broadcast %cst_18 : f32 to vector<16x1xf32>
    %26 = arith.maximumf %24, %25 : vector<16x1xf32>
    %27 = math.rsqrt %26 : vector<16x1xf32>
    %28 = vector.broadcast %27 : vector<16x1xf32> to vector<16x32xf32>
    %29 = arith.mulf %21, %28 : vector<16x32xf32>
    %30 = arith.truncf %29 : vector<16x32xf32> to vector<16x32xbf16>
    %c0_19 = arith.constant 0 : index
    %c0_20 = arith.constant 0 : index
    %31 = vector.load %arg8[%c0_19, %c0_20] : memref<16x32xbf16, #tpu.memory_space<vmem>>, vector<16x32xbf16>
    tpu.vector_store %arg8[%c0_19, %c0_20], %30 {strides = array<i32>} : memref<16x32xbf16, #tpu.memory_space<vmem>>, vector<16x32xbf16>,
    return
  }
  func.func @transform_0(%arg0: i32) -> (i32, i32) {
    %c0_i32 = arith.constant 0 : i32
    %c0_i32_0 = arith.constant 0 : i32
    return %arg0, %c0_i32 : i32, i32
  }
  func.func @transform_1(%arg0: i32) -> (i32, i32) {
    %c0_i32 = arith.constant 0 : i32
    %c0_i32_0 = arith.constant 0 : i32
    %c0_i32_1 = arith.constant 0 : i32
    return %c0_i32, %c0_i32_0 : i32, i32
  }
  func.func @transform_2(%arg0: i32) -> (i32, i32) {
    %c0_i32 = arith.constant 0 : i32
    %c0_i32_0 = arith.constant 0 : i32
    %c0_i32_1 = arith.constant 0 : i32
    return %c0_i32, %c0_i32_0 : i32, i32
  }
  func.func @transform_3(%arg0: i32) -> (i32, i32) {
    %c0_i32 = arith.constant 0 : i32
    %c0_i32_0 = arith.constant 0 : i32
    %c0_i32_1 = arith.constant 0 : i32
    return %c0_i32, %c0_i32_0 : i32, i32
  }
  func.func @transform_4(%arg0: i32) -> (i32, i32) {
    %c0_i32 = arith.constant 0 : i32
    %c0_i32_0 = arith.constant 0 : i32
    %c0_i32_1 = arith.constant 0 : i32
    return %c0_i32, %c0_i32_0 : i32, i32
  }
  func.func @transform_5(%arg0: i32) -> (i32, i32) {
    %c0_i32 = arith.constant 0 : i32
    %c0_i32_0 = arith.constant 0 : i32
    %c0_i32_1 = arith.constant 0 : i32
    return %c0_i32, %c0_i32_0 : i32, i32
  }
  func.func @transform_6(%arg0: i32) -> (i32, i32) {
    %c0_i32 = arith.constant 0 : i32
    %c0_i32_0 = arith.constant 0 : i32
    %c0_i32_1 = arith.constant 0 : i32
    return %c0_i32, %c0_i32_0 : i32, i32
  }
  func.func @transform_7(%arg0: i32) -> (i32, i32) {
    %c0_i32 = arith.constant 0 : i32
    %c0_i32_0 = arith.constant 0 : i32
    return %arg0, %c0_i32 : i32, i32
  }
}

</mosaic_0001>

<bundles_post_ra>
// kernel: tpu_custom_call.1
= control target key start
LH: loop header
LB: loop body
LE: loop exit
PB: predicated region body
PF: predicated region fallthrough
CT: control target
= control target key end

     0   :  { %12 = vsyncpa [#allocation3], 0  ;;  %s481_s0 = inlined_call_operand.hbm [shape: bf16[16,32], index: 0, kind: input, shape index: {}]   ;;  %s482_s1 = inlined_call_operand.vmem [shape: bf16[32,64], index: 1, kind: input, shape index: {}]   ;;  %s483_s2 = inlined_call_operand.vmem [shape: f32[1,64], index: 2, kind: input, shape index: {}]   ;;  %s484_s3 = inlined_call_operand.vmem [shape: bf16[64,64], index: 3, kind: input, shape index: {}]   ;;  %s485_s4 = inlined_call_operand.vmem [shape: f32[1,64], index: 4, kind: input, shape index: {}]   ;;  %s486_s5 = inlined_call_operand.vmem [shape: bf16[64,32], index: 5, kind: input, shape index: {}]   ;;  %s487_s6 = inlined_call_operand.vmem [shape: f32[1,32], index: 6, kind: input, shape index: {}]   ;;  %s488_s7 = inlined_call_operand.hbm [shape: bf16[16,32], index: 7, kind: output, shape index: {}]  }
   0x1   :  { %13 = vsyncpa [#allocation4], 0  ;;  %s18_s26 = sshll.u32 %s481_s0, 4  ;;  %s379_s27 = smov [#allocation2]   ;;  %s19_s26 = int_to_ptr.hbm [resolvable:$true] %s18_s26 }
   0x2   :  { %s20_s28 = sshll.u32 %s379_s27, 4  ;;  %s380_s29 = smov 64   ;;  %s21_s28 = int_to_ptr.vmem [resolvable:$true] %s20_s28 }
   0x3   :  { %s381_s30 = smov 4  }
   0x4   :  { %26 = dma.hbm_to_vmem [thread:$0]  %s19_s26, 128, %s21_s28, [#allocation3], %s380_s29, %s380_s29, %s381_s30  }
   0x5   :  { %375 = dma.done.wait [#allocation3], 128  }
   0x6   :  { %376 = vsyncadd [#allocation3], 4294967168  ;;  %v307_v0 = vld [vmem:[%s482_s1 + $0x8] sm:$0xff]  ;;  %v306_v1 = vld [vmem:[%s482_s1] sm:$0xff]  ;;  %vm71_vm0 = vcmask 261120   ;;  %vm128_vm1 = vcmask 523264  }
   0x7   :  { %81 = vmatpush.bf16.msra.mxu0 %v307_v0  ;;  %v305_v2 = vld [vmem:[#allocation2] sm:$0xff]  ;;  %v311_v3 = vld [vmem:[%s484_s3 + $0x18] sm:$0xff]  ;;  %v310_v4 = vld [vmem:[%s484_s3 + $0x10] sm:$0xff]  ;;  %vm236_vm5 = vcmask 257024   ;;  %s245_s10 = sshll.u32 %s488_s7, 4  ;;  %s246_s10 = int_to_ptr.hbm [resolvable:$true] %s245_s10 }
   0x8   :  { %136 = vmatpush.bf16.msra.mxu1 %v311_v3  ;;  %v309_v5 = vld [vmem:[%s484_s3 + $0x8] sm:$0xff]  ;;  %v308_v6 = vld [vmem:[%s484_s3] sm:$0xff]  ;;  %v315_v15 = vld [vmem:[%s486_s5 + $0x18] sm:$0xff] }
   0x9   :  { %v320_v8 = vld [vmem:[%s483_s2] ss:$0 sm:$0xff]  ;;  %192 = vmatpush.bf16.msra.mxu2 %v315_v15  ;;  %v314_v16 = vld [vmem:[%s486_s5 + $0x10] sm:$0xff]  ;;  %v313_v17 = vld [vmem:[%s486_s5 + $0x8] sm:$0xff] }
   0xa   :  { %v312_v18 = vld [vmem:[%s486_s5] sm:$0xff] }
   0xb   :  { %82 = vmatpush.bf16.msra.mxu0 %v306_v1  ;;  %v321_v20 = vld [vmem:[%s485_s4] ss:$0 sm:$0xff]  ;;  %s382_s4 = smov [#allocation5]  }
   0xc   :  { %137 = vmatpush.bf16.msra.mxu1 %v310_v4  ;;  %v322_v27 = vld [vmem:[%s487_s6] ss:$0 sm:$0xff]  ;;  %s243_s5 = sshll.u32 %s382_s4, 4  ;;  %s244_s5 = int_to_ptr.vmem [resolvable:$true] %s243_s5 }
   0xd   :  { %193 = vmatpush.bf16.msra.mxu2 %v314_v16 }
   0xe   :  { %270 = vmatmul.msk.bf16.vlgmr.msra.gmra.mxu0 %vm71_vm0, %v305_v2 }
  0x10   :  { %138 = vmatpush.bf16.msra.mxu1 %v309_v5 }
  0x11   :  { %194 = vmatpush.bf16.msra.mxu2 %v313_v17 }
  0x14   :  { %139 = vmatpush.bf16.msra.mxu1 %v308_v6 }
  0x15   :  { %195 = vmatpush.bf16.msra.mxu2 %v312_v18 }
  0x8b   :  { %v84_v7 = vpop.f32.mrf.mxu0 }
  0x8c   :  { %v85_v9 = vadd.f32 %v320_v8, %v84_v7 }
  0x8e   :  { %v89_v12 = vmax.f32 %v85_v9, 0.0 }
  0x93   :  { %v86_v10 = vpop.f32.mrf.mxu0 }
  0x94   :  { %v87_v11 = vadd.f32 %v320_v8, %v86_v10 }
  0x96   :  { %v90_v13 = vmax.f32 %v87_v11, 0.0 }
  0x98   :  { %v91_v14 = vpack.c.bf16 %v90_v13, %v89_v12 }
  0x9a   :  { %287 = vmatmul.msk.bf16.vlgmr.msra.gmra.mxu1 %vm128_vm1, %v91_v14 }
 0x117   :  { %v141_v19 = vpop.f32.mrf.mxu1 }
 0x118   :  { %v142_v21 = vadd.f32 %v321_v20, %v141_v19 }
 0x11a   :  { %v146_v24 = vmax.f32 %v142_v21, 0.0 }
 0x11f   :  { %v143_v22 = vpop.f32.mrf.mxu1 }
 0x120   :  { %v144_v23 = vadd.f32 %v321_v20, %v143_v22 }
 0x122   :  { %v147_v25 = vmax.f32 %v144_v23, 0.0 }
 0x124   :  { %v148_v26 = vpack.c.bf16 %v147_v25, %v146_v24 }
 0x126   :  { %304 = vmatmul.msk.bf16.vlgmr.msra.gmra.mxu2 %vm128_vm1, %v148_v26 }
 0x1a9   :  { %v197_v28 = vpop.f32.mrf.mxu2 }
 0x1aa   :  { %v198_v29 = vadd.f32 %v322_v27, %v197_v28 }
 0x1ac   :  { %v202_v30 = vmul.f32 %v198_v29, %v198_v29 }
 0x1ae   :  { %v204_v31 = vsel %vm71_vm0, %v202_v30, 0.0 }
 0x1af   :  { %205 = vadd.xlane.f32.xlu0 %v204_v31 }
 0x1b1   :  { %v199_v32 = vpop.f32.mrf.mxu2 }
 0x1b2   :  { %v200_v33 = vadd.f32 %v322_v27, %v199_v32 }
 0x1b4   :  { %v203_v34 = vmul.f32 %v200_v33, %v200_v33 }
 0x1b6   :  { %v207_v35 = vsel %vm71_vm0, %v203_v34, 0.0 }
 0x1b7   :  { %208 = vadd.xlane.f32.xlu0 %v207_v35 }
 0x222   :  { %v206_v36 = vpop.xlane.xlu0 %205 }
 0x223   :  { %v210_v37 = vmax.f32 %v206_v36, 1e-24 }
 0x225   :  { %323 = vrsqrt.f32 %v210_v37  ;;  %vm218_vm3 = vweird.f32 %v210_v37 }
 0x22a   :  { %v209_v38 = vpop.xlane.xlu0 %208 }
 0x22b   :  { %v324_v39 = vpop.eup %323  ;;  %v211_v40 = vmax.f32 %v209_v38, 1e-24 }
 0x22c   :  { %v213_v41 = vmul.f32 %v324_v39, %v210_v37  ;;  %vm219_vm2 = vweird.f32 %v324_v39 }
 0x22d   :  { %325 = vrsqrt.f32 %v211_v40  ;;  %vm220_vm4 = vmor %vm218_vm3, %vm219_vm2  ;;  %vm228_vm7 = vweird.f32 %v211_v40 }
 0x22e   :  { %v214_v42 = vmul.f32 %v324_v39, %v213_v41 }
 0x230   :  { %v215_v43 = vmul.f32 0.5, %v214_v42 }
 0x232   :  { %v216_v44 = vsub.f32 1.5, %v215_v43 }
 0x233   :  { %v326_v45 = vpop.eup %325 }
 0x234   :  { %v217_v46 = vmul.f32 %v324_v39, %v216_v44  ;;  %v223_v47 = vmul.f32 %v326_v45, %v211_v40  ;;  %vm229_vm6 = vweird.f32 %v326_v45 }
 0x235   :  { %vm230_vm8 = vmor %vm228_vm7, %vm229_vm6 }
 0x236   :  { %v221_v48 = vsel %vm220_vm4, %v324_v39, %v217_v46  ;;  %v224_v49 = vmul.f32 %v326_v45, %v223_v47 }
 0x237   :  { %v232_v50 = vmul.f32 %v221_v48, %v198_v29 }
 0x238   :  { %v225_v51 = vmul.f32 0.5, %v224_v49 }
 0x239   :  { %v234_v52 = vpack.c.bf16 %v232_v50, %v232_v50 }
 0x23a   :  { %v226_v53 = vsub.f32 1.5, %v225_v51 }
 0x23b   :  { %237 = vst.msk [vmem:[#allocation5] sm:$0xf] %vm236_vm5, %v234_v52 }
 0x23c   :  { %v227_v54 = vmul.f32 %v326_v45, %v226_v53 }
 0x23e   :  { %v231_v55 = vsel %vm230_vm8, %v326_v45, %v227_v54 }
 0x23f   :  { %v233_v56 = vmul.f32 %v231_v55, %v200_v33 }
 0x241   :  { %v235_v57 = vpack.c.bf16 %v233_v56, %v233_v56 }
 0x243   :  { %238 = vst.msk [vmem:[#allocation5 + $0x4] sm:$0xf] %vm236_vm5, %v235_v57 }
 0x244   :  { %251 = dma.vmem_to_hbm [thread:$0]  %s244_s5, 128, %s246_s10, [#allocation4], %s380_s29, %s380_s29, %s381_s30  }
 0x245   :  { %377 = dma.done.wait [#allocation4], 128  }
 0x246   :  { %378 = vsyncadd [#allocation4], 4294967168 }
 0x247   :  { %256 = vsyncpa [#allocation3], 1 }
 0x248   :  { %257 = vsyncpa [#allocation4], 1 }

</bundles_post_ra>
